<compile_context>
chip_gen: v7x
topology: tpu7x:2x2x1
jax: 0.10.0
libtpu: 0.0.40
codegen_flags: <defaults>
</compile_context>

<pallas_src>
import math
from functools import partial

import jax
import jax.numpy as jnp
from jax.experimental import pallas as pl
from jax.experimental.pallas import tpu as pltpu

KSIZE = 5
PAD = 2
LANE = 128


def _round_up(x, m):
    return ((x + m - 1) // m) * m


def _padded_width(h, w):
    """Padded image width WPr >= w + 2*PAD.  Prefer a WPr that makes the kernel's output
    minor dim h*WPr a multiple of 128 (unmasked vector stores), but never pay more than
    +25% extra width for it -- a masked tail store is cheaper than +100% work."""
    base = w + 2 * PAD
    step = LANE // math.gcd(h, LANE)
    cand = _round_up(base, step)
    return cand if cand * 4 <= base * 5 else base


def _pick_vmem_limit(per_step_bytes):
    """Scoped-VMEM limit derived from the actual block/scratch footprint, clamped to the
    chip's physical VMEM minus headroom (v5e/v6e: 128 MiB, v7x: 64 MiB per core)."""
    try:
        cap = int(pltpu.get_tpu_info().vmem_capacity_bytes)
    except Exception:  # pragma: no cover - conservative fallback (v7x per-core size)
        cap = 64 * 1024 * 1024
    limit = max(int(per_step_bytes * 1.5) + (4 << 20), 32 << 20)
    return int(min(limit, cap - (8 << 20)))


def _feature_encoder_kernel(x_ref, mean_ref, w_ref, o_ref, xcol_ref, xn_ref, *,
                            wpr, mout, cin, k_taps):
    """One grid step = `block_n` images.

    x_ref    : (block_n, Cin, L)            zero-padded, spatially flattened images (f32)
    mean_ref : (Cin, L)                     per-channel mean map, 0 on padded border / tail (f32)
    w_ref    : (Cout, 25*Cin + 1)           rsqrt(var)-scaled conv weights + bias column (mm dtype)
    o_ref    : (block_n, Cout, Mout)        output, Mout = H*WPr (f32)
    xcol_ref : (25*Cin + 1, block_n*Mout)   VMEM im2col scratch (mm dtype)
    xn_ref   : (Cin, L)                     VMEM scratch for one normalized image (mm dtype)
    """
    block_n = x_ref.shape[0]
    mm_dtype = xcol_ref.dtype

    # Bias row: the last im2col row is all-ones so the bias column of w_ref is added by the
    # MXU itself (K pads to the MXU depth anyway -> free).  Written every step: scratch is
    # uninitialized and, with a "parallel" batch axis, step 0 may never run on a given core.
    xcol_ref[k_taps:k_taps + 1, :] = jnp.ones((1, xcol_ref.shape[1]), mm_dtype)

    for b in range(block_n):
        # Normalize (mean part only; rsqrt(var) is pre-folded into the weights) in f32 on the
        # VPU, cast once to the matmul dtype, and park it in VMEM so the tap copies below are
        # ref->ref slice copies -- no long-lived unaligned vreg values, bounded live range.
        # The padded border stays exactly zero (mean map is 0 there), matching conv padding.
        xn_ref[...] = (x_ref[b] - mean_ref[...]).astype(mm_dtype)

        # im2col: each of the 25 taps is a lane-shifted slice of the flattened padded image
        # (no reshape, no relayout).  Rows ordered (kh, kw, ci) to match w_ref's columns.
        for kh in range(KSIZE):
            for kw in range(KSIZE):
                t = kh * KSIZE + kw
                s = kh * wpr + kw
                xcol_ref[t * cin:(t + 1) * cin, b * mout:(b + 1) * mout] = \
                    xn_ref[:, s:s + mout]

    # Single K = 25*Cin + 1 MXU contraction covering all block_n images, f32 accumulation.
    acc = jnp.dot(w_ref[...], xcol_ref[...], preferred_element_type=jnp.float32)

    for b in range(block_n):
        # Lane-aligned slices of acc (b*mout is a multiple of 128 when mout is) -> cheap,
        # and the output block's minor dim (Mout) keeps the stores lane-dense.
        o_ref[b] = acc[:, b * mout:(b + 1) * mout].astype(o_ref.dtype)


def feature_encoder_forward(image_nchw, means, variances, weight_oihw, bias, *,
                            matmul_dtype=jnp.bfloat16, block_n=None):
    """image_nchw: (N, Cin, H, W); means/variances: (Cin,);
    weight_oihw: (Cout, Cin, 5, 5) PyTorch layout; bias: (Cout,).
    Returns (N, Cout, H, W) float32, matching FeatureEncoder.forward.
    matmul_dtype=jnp.float32 gives full-precision parity (kernel is not MXU-bound)."""
    n, cin, h, w = image_nchw.shape
    cout = weight_oihw.shape[0]

    hp = h + 2 * PAD
    wpr = _padded_width(h, w)                         # padded width (lane-density aware)
    assert wpr >= w + 2 * PAD                         # taps never wrap rows
    mout = h * wpr                                    # kernel output minor dim
    l_in = _round_up(hp * wpr + (KSIZE - 1), LANE)    # kernel input minor dim
    assert (KSIZE - 1) * wpr + (KSIZE - 1) + mout <= l_in
    k_taps = KSIZE * KSIZE * cin
    kp1 = k_taps + 1                                  # + bias row

    # Batch block: target >= min(N, 8) grid steps so each TensorCore has several pipeline
    # stages to overlap (input DMA / compute / output writeback); cap block_n at 8.
    if block_n is None:
        target_steps = min(n, 8)
        block_n = 1
        for d in range(min(8, n), 0, -1):
            if n % d == 0 and (n // d) >= target_steps:
                block_n = d
                break
    assert n % block_n == 0
    grid = (n // block_n,)

    # --- wrapper-side layout plumbing (done once, outside the kernel) ---
    # TODO(synk): at real fastMRI sizes, do this zero-pad inside the kernel (DMA unpadded
    # rows into a pre-zeroed VMEM slab) to avoid the extra full-array HBM copies here.
    x = image_nchw.astype(jnp.float32)
    xpad = jnp.pad(x, ((0, 0), (0, 0), (PAD, PAD), (PAD, wpr - w - PAD)))
    xflat = jnp.pad(xpad.reshape(n, cin, hp * wpr),
                    ((0, 0), (0, 0), (0, l_in - hp * wpr)))

    # Mean map: per-channel mean on real pixels, exactly zero on the padded border / tail so
    # the border of (x - mean) stays zero, matching PyTorch's zero padding of the normalized
    # image.  The -mean term is deliberately NOT folded into the bias for this reason.
    mean_img = jnp.broadcast_to(means.astype(jnp.float32).reshape(cin, 1, 1), (cin, h, w))
    mean_pad = jnp.pad(mean_img, ((0, 0), (PAD, PAD), (PAD, wpr - w - PAD)))
    mean_flat = jnp.pad(mean_pad.reshape(cin, hp * wpr), ((0, 0), (0, l_in - hp * wpr)))

    # rsqrt(var) (no eps, as in the module -- precondition: variances > 0) folded into the
    # weights; bias appended as an extra K column (matches the kernel's ones row).
    inv_std = jax.lax.rsqrt(variances.astype(jnp.float32))
    w_scaled = weight_oihw.astype(jnp.float32) * inv_std[None, :, None, None]
    # (Cout, Cin, kh, kw) -> (Cout, kh, kw, Cin) -> (Cout, 25*Cin); matches xcol row order.
    w_taps = jnp.transpose(w_scaled, (0, 2, 3, 1)).reshape(cout, k_taps)
    w_full = jnp.concatenate([w_taps, bias.astype(jnp.float32).reshape(cout, 1)], axis=1)
    w_full = w_full.astype(matmul_dtype)

    # Scoped-VMEM budget from the actual footprint (double-buffered blocks + scratch).
    bpe_f32 = 4
    bpe_mm = jnp.dtype(matmul_dtype).itemsize
    per_step = (2 * block_n * cin * l_in * bpe_f32        # x block
                + 2 * block_n * cout * mout * bpe_f32     # out block
                + 2 * cin * l_in * bpe_f32                # mean map (constant index map)
                + 2 * cout * kp1 * bpe_mm                 # weights
                + kp1 * block_n * mout * bpe_mm           # im2col scratch
                + cin * l_in * bpe_mm)                    # xn scratch
    vmem_limit = _pick_vmem_limit(per_step)

    kernel = partial(_feature_encoder_kernel, wpr=wpr, mout=mout, cin=cin, k_taps=k_taps)

    grid_spec = pltpu.PrefetchScalarGridSpec(
        num_scalar_prefetch=0,
        grid=grid,
        in_specs=[
            pl.BlockSpec((block_n, cin, l_in), lambda g: (g, 0, 0)),
            pl.BlockSpec((cin, l_in), lambda g: (0, 0)),
            pl.BlockSpec((cout, kp1), lambda g: (0, 0)),
        ],
        out_specs=pl.BlockSpec((block_n, cout, mout), lambda g: (g, 0, 0)),
        scratch_shapes=[
            pltpu.VMEM((kp1, block_n * mout), matmul_dtype),   # im2col columns (+ ones row)
            pltpu.VMEM((cin, l_in), matmul_dtype),             # one normalized image
        ],
    )

    out_flat = pl.pallas_call(
        kernel,
        out_shape=jax.ShapeDtypeStruct((n, cout, mout), jnp.float32),
        grid_spec=grid_spec,
        compiler_params=pltpu.CompilerParams(
            dimension_semantics=("parallel",),
            vmem_limit_bytes=vmem_limit,
        ),
    )(xflat, mean_flat, w_full)

    # (N, Cout, H*WPr) -> (N, Cout, H, W); output already NCHW like PyTorch.
    return out_flat.reshape(n, cout, h, wpr)[:, :, :, :w]


def _reference_forward(image, means, variances, weight, bias):
    """Exact f32 reference mirroring the PyTorch forward."""
    m = means.reshape(1, -1, 1, 1)
    v = variances.reshape(1, -1, 1, 1)
    xn = (image - m) * jax.lax.rsqrt(v)
    out = jax.lax.conv_general_dilated(
        xn, weight, window_strides=(1, 1), padding=((PAD, PAD), (PAD, PAD)),
        dimension_numbers=("NCHW", "OIHW", "NCHW"),
        precision=jax.lax.Precision.HIGHEST,
    )
    return out + bias.reshape(1, -1, 1, 1)


def _reference_forward_quantized(image, means, variances, weight, bias):
    """Reference with the kernel's exact bf16 operand rounding (activations, scaled weights,
    bias) and f32 accumulation, so differences vs the Pallas kernel are accumulation order
    only."""
    inv_std = jax.lax.rsqrt(variances.astype(jnp.float32))
    xn = image.astype(jnp.float32) - means.astype(jnp.float32).reshape(1, -1, 1, 1)
    xn_q = xn.astype(jnp.bfloat16).astype(jnp.float32)
    w_q = (weight.astype(jnp.float32) * inv_std[None, :, None, None]
           ).astype(jnp.bfloat16).astype(jnp.float32)
    b_q = bias.astype(jnp.float32).astype(jnp.bfloat16).astype(jnp.float32)
    out = jax.lax.conv_general_dilated(
        xn_q, w_q, window_strides=(1, 1), padding=((PAD, PAD), (PAD, PAD)),
        dimension_numbers=("NCHW", "OIHW", "NCHW"),
        precision=jax.lax.Precision.HIGHEST,
    )
    return out + b_q.reshape(1, -1, 1, 1)


if __name__ == "__main__":
    N, Cin, H, W = 2, 4, 16, 16
    Cout = 32  # feature_chans

    key = jax.random.PRNGKey(0)
    k_img, k_mean, k_var, k_w, k_b = jax.random.split(key, 5)

    image = jax.random.normal(k_img, (N, Cin, H, W), dtype=jnp.float32)
    means = jax.random.normal(k_mean, (Cin,), dtype=jnp.float32)
    variances = jax.random.uniform(k_var, (Cin,), minval=0.5, maxval=1.5,
                                   dtype=jnp.float32)

    fan_in = Cin * KSIZE * KSIZE
    bound = 1.0 / math.sqrt(fan_in)
    weight = jax.random.uniform(k_w, (Cout, Cin, KSIZE, KSIZE),
                                minval=-bound, maxval=bound, dtype=jnp.float32)
    bias = jax.random.uniform(k_b, (Cout,), minval=-bound, maxval=bound,
                              dtype=jnp.float32)

    out = feature_encoder_forward(image, means, variances, weight, bias)
    out = jax.block_until_ready(out)
    assert out.shape == (N, Cout, H, W)

    # Tight check vs a reference that applies the same bf16 operand rounding (remaining
    # differences are f32 accumulation order only).
    ref_q = _reference_forward_quantized(image, means, variances, weight, bias)
    assert jnp.allclose(out, ref_q, atol=3e-4, rtol=3e-4), "mismatch vs bf16-operand reference"

    # Loose sanity check vs the exact f32 module semantics (bf16 operand rounding only).
    ref = _reference_forward(image, means, variances, weight, bias)
    assert jnp.allclose(out, ref, atol=1e-1, rtol=1e-1), "mismatch vs f32 reference"

    print("KERNEL_OK")
</pallas_src>

<mosaic_0001>
module attributes {stable_mosaic.version = 11 : i64} {
  func.func @_feature_encoder_kernel(%arg0: i32, %arg1: memref<1x4x512xf32, #tpu.memory_space<vmem>>, %arg2: memref<4x512xf32, #tpu.memory_space<vmem>>, %arg3: memref<32x101xbf16, #tpu.memory_space<vmem>>, %arg4: memref<1x32x384xf32, #tpu.memory_space<vmem>>, %arg5: memref<101x384xbf16, #tpu.memory_space<vmem>>, %arg6: memref<4x512xbf16, #tpu.memory_space<vmem>>) attributes {dimension_semantics = [#tpu.dimension_semantics<parallel>], iteration_bounds = array<i64: 2>, scalar_prefetch = 0 : i64, scratch_operands = 2 : i64, tpu.core_type = #tpu.core_type<tc>, window_params = [{transform_indices = @transform_0, window_bounds = array<i64: 1, 4, 512>}, {pipeline_mode = #tpu.pipeline_mode<synchronous>, transform_indices = @transform_1, window_bounds = array<i64: 4, 512>}, {pipeline_mode = #tpu.pipeline_mode<synchronous>, transform_indices = @transform_2, window_bounds = array<i64: 32, 101>}, {transform_indices = @transform_3, window_bounds = array<i64: 1, 32, 384>}]} {
    %cst = arith.constant 1.000000e+00 : bf16
    %0 = vector.broadcast %cst : bf16 to vector<1x384xbf16>
    %c100 = arith.constant 100 : index
    %c0 = arith.constant 0 : index
    %1 = vector.load %arg5[%c100, %c0] : memref<101x384xbf16, #tpu.memory_space<vmem>>, vector<1x384xbf16>
    tpu.vector_store %arg5[%c100, %c0], %0 {strides = array<i32>} : memref<101x384xbf16, #tpu.memory_space<vmem>>, vector<1x384xbf16>,
    %c0_0 = arith.constant 0 : index
    %c0_1 = arith.constant 0 : index
    %c0_2 = arith.constant 0 : index
    %2 = vector.load %arg1[%c0_0, %c0_1, %c0_2] : memref<1x4x512xf32, #tpu.memory_space<vmem>>, vector<1x4x512xf32>
    %3 = vector.shape_cast %2 : vector<1x4x512xf32> to vector<4x512xf32>
    %c0_3 = arith.constant 0 : index
    %c0_4 = arith.constant 0 : index
    %4 = vector.load %arg2[%c0_3, %c0_4] : memref<4x512xf32, #tpu.memory_space<vmem>>, vector<4x512xf32>
    %5 = arith.subf %3, %4 : vector<4x512xf32>
    %6 = arith.truncf %5 : vector<4x512xf32> to vector<4x512xbf16>
    %c0_5 = arith.constant 0 : index
    %c0_6 = arith.constant 0 : index
    %7 = vector.load %arg6[%c0_5, %c0_6] : memref<4x512xbf16, #tpu.memory_space<vmem>>, vector<4x512xbf16>
    tpu.vector_store %arg6[%c0_5, %c0_6], %6 {strides = array<i32>} : memref<4x512xbf16, #tpu.memory_space<vmem>>, vector<4x512xbf16>,
    %c0_7 = arith.constant 0 : index
    %c0_8 = arith.constant 0 : index
    %8 = vector.load %arg6[%c0_7, %c0_8] : memref<4x512xbf16, #tpu.memory_space<vmem>>, vector<4x384xbf16>
    %c0_9 = arith.constant 0 : index
    %c0_10 = arith.constant 0 : index
    %9 = vector.load %arg5[%c0_9, %c0_10] : memref<101x384xbf16, #tpu.memory_space<vmem>>, vector<4x384xbf16>
    tpu.vector_store %arg5[%c0_9, %c0_10], %8 {strides = array<i32>} : memref<101x384xbf16, #tpu.memory_space<vmem>>, vector<4x384xbf16>,
    %c0_11 = arith.constant 0 : index
    %c1 = arith.constant 1 : index
    %10 = vector.load %arg6[%c0_11, %c1] : memref<4x512xbf16, #tpu.memory_space<vmem>>, vector<4x384xbf16>
    %c4 = arith.constant 4 : index
    %c0_12 = arith.constant 0 : index
    %11 = vector.load %arg5[%c4, %c0_12] : memref<101x384xbf16, #tpu.memory_space<vmem>>, vector<4x384xbf16>
    tpu.vector_store %arg5[%c4, %c0_12], %10 {strides = array<i32>} : memref<101x384xbf16, #tpu.memory_space<vmem>>, vector<4x384xbf16>,
    %c0_13 = arith.constant 0 : index
    %c2 = arith.constant 2 : index
    %12 = vector.load %arg6[%c0_13, %c2] : memref<4x512xbf16, #tpu.memory_space<vmem>>, vector<4x384xbf16>
    %c8 = arith.constant 8 : index
    %c0_14 = arith.constant 0 : index
    %13 = vector.load %arg5[%c8, %c0_14] : memref<101x384xbf16, #tpu.memory_space<vmem>>, vector<4x384xbf16>
    tpu.vector_store %arg5[%c8, %c0_14], %12 {strides = array<i32>} : memref<101x384xbf16, #tpu.memory_space<vmem>>, vector<4x384xbf16>,
    %c0_15 = arith.constant 0 : index
    %c3 = arith.constant 3 : index
    %14 = vector.load %arg6[%c0_15, %c3] : memref<4x512xbf16, #tpu.memory_space<vmem>>, vector<4x384xbf16>
    %c12 = arith.constant 12 : index
    %c0_16 = arith.constant 0 : index
    %15 = vector.load %arg5[%c12, %c0_16] : memref<101x384xbf16, #tpu.memory_space<vmem>>, vector<4x384xbf16>
    tpu.vector_store %arg5[%c12, %c0_16], %14 {strides = array<i32>} : memref<101x384xbf16, #tpu.memory_space<vmem>>, vector<4x384xbf16>,
    %c0_17 = arith.constant 0 : index
    %c4_18 = arith.constant 4 : index
    %16 = vector.load %arg6[%c0_17, %c4_18] : memref<4x512xbf16, #tpu.memory_space<vmem>>, vector<4x384xbf16>
    %c16 = arith.constant 16 : index
    %c0_19 = arith.constant 0 : index
    %17 = vector.load %arg5[%c16, %c0_19] : memref<101x384xbf16, #tpu.memory_space<vmem>>, vector<4x384xbf16>
    tpu.vector_store %arg5[%c16, %c0_19], %16 {strides = array<i32>} : memref<101x384xbf16, #tpu.memory_space<vmem>>, vector<4x384xbf16>,
    %c0_20 = arith.constant 0 : index
    %c24 = arith.constant 24 : index
    %18 = vector.load %arg6[%c0_20, %c24] : memref<4x512xbf16, #tpu.memory_space<vmem>>, vector<4x384xbf16>
    %c20 = arith.constant 20 : index
    %c0_21 = arith.constant 0 : index
    %19 = vector.load %arg5[%c20, %c0_21] : memref<101x384xbf16, #tpu.memory_space<vmem>>, vector<4x384xbf16>
    tpu.vector_store %arg5[%c20, %c0_21], %18 {strides = array<i32>} : memref<101x384xbf16, #tpu.memory_space<vmem>>, vector<4x384xbf16>,
    %c0_22 = arith.constant 0 : index
    %c25 = arith.constant 25 : index
    %20 = vector.load %arg6[%c0_22, %c25] : memref<4x512xbf16, #tpu.memory_space<vmem>>, vector<4x384xbf16>
    %c24_23 = arith.constant 24 : index
    %c0_24 = arith.constant 0 : index
    %21 = vector.load %arg5[%c24_23, %c0_24] : memref<101x384xbf16, #tpu.memory_space<vmem>>, vector<4x384xbf16>
    tpu.vector_store %arg5[%c24_23, %c0_24], %20 {strides = array<i32>} : memref<101x384xbf16, #tpu.memory_space<vmem>>, vector<4x384xbf16>,
    %c0_25 = arith.constant 0 : index
    %c26 = arith.constant 26 : index
    %22 = vector.load %arg6[%c0_25, %c26] : memref<4x512xbf16, #tpu.memory_space<vmem>>, vector<4x384xbf16>
    %c28 = arith.constant 28 : index
    %c0_26 = arith.constant 0 : index
    %23 = vector.load %arg5[%c28, %c0_26] : memref<101x384xbf16, #tpu.memory_space<vmem>>, vector<4x384xbf16>
    tpu.vector_store %arg5[%c28, %c0_26], %22 {strides = array<i32>} : memref<101x384xbf16, #tpu.memory_space<vmem>>, vector<4x384xbf16>,
    %c0_27 = arith.constant 0 : index
    %c27 = arith.constant 27 : index
    %24 = vector.load %arg6[%c0_27, %c27] : memref<4x512xbf16, #tpu.memory_space<vmem>>, vector<4x384xbf16>
    %c32 = arith.constant 32 : index
    %c0_28 = arith.constant 0 : index
    %25 = vector.load %arg5[%c32, %c0_28] : memref<101x384xbf16, #tpu.memory_space<vmem>>, vector<4x384xbf16>
    tpu.vector_store %arg5[%c32, %c0_28], %24 {strides = array<i32>} : memref<101x384xbf16, #tpu.memory_space<vmem>>, vector<4x384xbf16>,
    %c0_29 = arith.constant 0 : index
    %c28_30 = arith.constant 28 : index
    %26 = vector.load %arg6[%c0_29, %c28_30] : memref<4x512xbf16, #tpu.memory_space<vmem>>, vector<4x384xbf16>
    %c36 = arith.constant 36 : index
    %c0_31 = arith.constant 0 : index
    %27 = vector.load %arg5[%c36, %c0_31] : memref<101x384xbf16, #tpu.memory_space<vmem>>, vector<4x384xbf16>
    tpu.vector_store %arg5[%c36, %c0_31], %26 {strides = array<i32>} : memref<101x384xbf16, #tpu.memory_space<vmem>>, vector<4x384xbf16>,
    %c0_32 = arith.constant 0 : index
    %c48 = arith.constant 48 : index
    %28 = vector.load %arg6[%c0_32, %c48] : memref<4x512xbf16, #tpu.memory_space<vmem>>, vector<4x384xbf16>
    %c40 = arith.constant 40 : index
    %c0_33 = arith.constant 0 : index
    %29 = vector.load %arg5[%c40, %c0_33] : memref<101x384xbf16, #tpu.memory_space<vmem>>, vector<4x384xbf16>
    tpu.vector_store %arg5[%c40, %c0_33], %28 {strides = array<i32>} : memref<101x384xbf16, #tpu.memory_space<vmem>>, vector<4x384xbf16>,
    %c0_34 = arith.constant 0 : index
    %c49 = arith.constant 49 : index
    %30 = vector.load %arg6[%c0_34, %c49] : memref<4x512xbf16, #tpu.memory_space<vmem>>, vector<4x384xbf16>
    %c44 = arith.constant 44 : index
    %c0_35 = arith.constant 0 : index
    %31 = vector.load %arg5[%c44, %c0_35] : memref<101x384xbf16, #tpu.memory_space<vmem>>, vector<4x384xbf16>
    tpu.vector_store %arg5[%c44, %c0_35], %30 {strides = array<i32>} : memref<101x384xbf16, #tpu.memory_space<vmem>>, vector<4x384xbf16>,
    %c0_36 = arith.constant 0 : index
    %c50 = arith.constant 50 : index
    %32 = vector.load %arg6[%c0_36, %c50] : memref<4x512xbf16, #tpu.memory_space<vmem>>, vector<4x384xbf16>
    %c48_37 = arith.constant 48 : index
    %c0_38 = arith.constant 0 : index
    %33 = vector.load %arg5[%c48_37, %c0_38] : memref<101x384xbf16, #tpu.memory_space<vmem>>, vector<4x384xbf16>
    tpu.vector_store %arg5[%c48_37, %c0_38], %32 {strides = array<i32>} : memref<101x384xbf16, #tpu.memory_space<vmem>>, vector<4x384xbf16>,
    %c0_39 = arith.constant 0 : index
    %c51 = arith.constant 51 : index
    %34 = vector.load %arg6[%c0_39, %c51] : memref<4x512xbf16, #tpu.memory_space<vmem>>, vector<4x384xbf16>
    %c52 = arith.constant 52 : index
    %c0_40 = arith.constant 0 : index
    %35 = vector.load %arg5[%c52, %c0_40] : memref<101x384xbf16, #tpu.memory_space<vmem>>, vector<4x384xbf16>
    tpu.vector_store %arg5[%c52, %c0_40], %34 {strides = array<i32>} : memref<101x384xbf16, #tpu.memory_space<vmem>>, vector<4x384xbf16>,
    %c0_41 = arith.constant 0 : index
    %c52_42 = arith.constant 52 : index
    %36 = vector.load %arg6[%c0_41, %c52_42] : memref<4x512xbf16, #tpu.memory_space<vmem>>, vector<4x384xbf16>
    %c56 = arith.constant 56 : index
    %c0_43 = arith.constant 0 : index
    %37 = vector.load %arg5[%c56, %c0_43] : memref<101x384xbf16, #tpu.memory_space<vmem>>, vector<4x384xbf16>
    tpu.vector_store %arg5[%c56, %c0_43], %36 {strides = array<i32>} : memref<101x384xbf16, #tpu.memory_space<vmem>>, vector<4x384xbf16>,
    %c0_44 = arith.constant 0 : index
    %c72 = arith.constant 72 : index
    %38 = vector.load %arg6[%c0_44, %c72] : memref<4x512xbf16, #tpu.memory_space<vmem>>, vector<4x384xbf16>
    %c60 = arith.constant 60 : index
    %c0_45 = arith.constant 0 : index
    %39 = vector.load %arg5[%c60, %c0_45] : memref<101x384xbf16, #tpu.memory_space<vmem>>, vector<4x384xbf16>
    tpu.vector_store %arg5[%c60, %c0_45], %38 {strides = array<i32>} : memref<101x384xbf16, #tpu.memory_space<vmem>>, vector<4x384xbf16>,
    %c0_46 = arith.constant 0 : index
    %c73 = arith.constant 73 : index
    %40 = vector.load %arg6[%c0_46, %c73] : memref<4x512xbf16, #tpu.memory_space<vmem>>, vector<4x384xbf16>
    %c64 = arith.constant 64 : index
    %c0_47 = arith.constant 0 : index
    %41 = vector.load %arg5[%c64, %c0_47] : memref<101x384xbf16, #tpu.memory_space<vmem>>, vector<4x384xbf16>
    tpu.vector_store %arg5[%c64, %c0_47], %40 {strides = array<i32>} : memref<101x384xbf16, #tpu.memory_space<vmem>>, vector<4x384xbf16>,
    %c0_48 = arith.constant 0 : index
    %c74 = arith.constant 74 : index
    %42 = vector.load %arg6[%c0_48, %c74] : memref<4x512xbf16, #tpu.memory_space<vmem>>, vector<4x384xbf16>
    %c68 = arith.constant 68 : index
    %c0_49 = arith.constant 0 : index
    %43 = vector.load %arg5[%c68, %c0_49] : memref<101x384xbf16, #tpu.memory_space<vmem>>, vector<4x384xbf16>
    tpu.vector_store %arg5[%c68, %c0_49], %42 {strides = array<i32>} : memref<101x384xbf16, #tpu.memory_space<vmem>>, vector<4x384xbf16>,
    %c0_50 = arith.constant 0 : index
    %c75 = arith.constant 75 : index
    %44 = vector.load %arg6[%c0_50, %c75] : memref<4x512xbf16, #tpu.memory_space<vmem>>, vector<4x384xbf16>
    %c72_51 = arith.constant 72 : index
    %c0_52 = arith.constant 0 : index
    %45 = vector.load %arg5[%c72_51, %c0_52] : memref<101x384xbf16, #tpu.memory_space<vmem>>, vector<4x384xbf16>
    tpu.vector_store %arg5[%c72_51, %c0_52], %44 {strides = array<i32>} : memref<101x384xbf16, #tpu.memory_space<vmem>>, vector<4x384xbf16>,
    %c0_53 = arith.constant 0 : index
    %c76 = arith.constant 76 : index
    %46 = vector.load %arg6[%c0_53, %c76] : memref<4x512xbf16, #tpu.memory_space<vmem>>, vector<4x384xbf16>
    %c76_54 = arith.constant 76 : index
    %c0_55 = arith.constant 0 : index
    %47 = vector.load %arg5[%c76_54, %c0_55] : memref<101x384xbf16, #tpu.memory_space<vmem>>, vector<4x384xbf16>
    tpu.vector_store %arg5[%c76_54, %c0_55], %46 {strides = array<i32>} : memref<101x384xbf16, #tpu.memory_space<vmem>>, vector<4x384xbf16>,
    %c0_56 = arith.constant 0 : index
    %c96 = arith.constant 96 : index
    %48 = vector.load %arg6[%c0_56, %c96] : memref<4x512xbf16, #tpu.memory_space<vmem>>, vector<4x384xbf16>
    %c80 = arith.constant 80 : index
    %c0_57 = arith.constant 0 : index
    %49 = vector.load %arg5[%c80, %c0_57] : memref<101x384xbf16, #tpu.memory_space<vmem>>, vector<4x384xbf16>
    tpu.vector_store %arg5[%c80, %c0_57], %48 {strides = array<i32>} : memref<101x384xbf16, #tpu.memory_space<vmem>>, vector<4x384xbf16>,
    %c0_58 = arith.constant 0 : index
    %c97 = arith.constant 97 : index
    %50 = vector.load %arg6[%c0_58, %c97] : memref<4x512xbf16, #tpu.memory_space<vmem>>, vector<4x384xbf16>
    %c84 = arith.constant 84 : index
    %c0_59 = arith.constant 0 : index
    %51 = vector.load %arg5[%c84, %c0_59] : memref<101x384xbf16, #tpu.memory_space<vmem>>, vector<4x384xbf16>
    tpu.vector_store %arg5[%c84, %c0_59], %50 {strides = array<i32>} : memref<101x384xbf16, #tpu.memory_space<vmem>>, vector<4x384xbf16>,
    %c0_60 = arith.constant 0 : index
    %c98 = arith.constant 98 : index
    %52 = vector.load %arg6[%c0_60, %c98] : memref<4x512xbf16, #tpu.memory_space<vmem>>, vector<4x384xbf16>
    %c88 = arith.constant 88 : index
    %c0_61 = arith.constant 0 : index
    %53 = vector.load %arg5[%c88, %c0_61] : memref<101x384xbf16, #tpu.memory_space<vmem>>, vector<4x384xbf16>
    tpu.vector_store %arg5[%c88, %c0_61], %52 {strides = array<i32>} : memref<101x384xbf16, #tpu.memory_space<vmem>>, vector<4x384xbf16>,
    %c0_62 = arith.constant 0 : index
    %c99 = arith.constant 99 : index
    %54 = vector.load %arg6[%c0_62, %c99] : memref<4x512xbf16, #tpu.memory_space<vmem>>, vector<4x384xbf16>
    %c92 = arith.constant 92 : index
    %c0_63 = arith.constant 0 : index
    %55 = vector.load %arg5[%c92, %c0_63] : memref<101x384xbf16, #tpu.memory_space<vmem>>, vector<4x384xbf16>
    tpu.vector_store %arg5[%c92, %c0_63], %54 {strides = array<i32>} : memref<101x384xbf16, #tpu.memory_space<vmem>>, vector<4x384xbf16>,
    %c0_64 = arith.constant 0 : index
    %c100_65 = arith.constant 100 : index
    %56 = vector.load %arg6[%c0_64, %c100_65] : memref<4x512xbf16, #tpu.memory_space<vmem>>, vector<4x384xbf16>
    %c96_66 = arith.constant 96 : index
    %c0_67 = arith.constant 0 : index
    %57 = vector.load %arg5[%c96_66, %c0_67] : memref<101x384xbf16, #tpu.memory_space<vmem>>, vector<4x384xbf16>
    tpu.vector_store %arg5[%c96_66, %c0_67], %56 {strides = array<i32>} : memref<101x384xbf16, #tpu.memory_space<vmem>>, vector<4x384xbf16>,
    %c0_68 = arith.constant 0 : index
    %c0_69 = arith.constant 0 : index
    %58 = vector.load %arg3[%c0_68, %c0_69] : memref<32x101xbf16, #tpu.memory_space<vmem>>, vector<32x101xbf16>
    %c0_70 = arith.constant 0 : index
    %c0_71 = arith.constant 0 : index
    %59 = vector.load %arg5[%c0_70, %c0_71] : memref<101x384xbf16, #tpu.memory_space<vmem>>, vector<101x384xbf16>
    %cst_72 = arith.constant dense<0.000000e+00> : vector<32x384xf32>
    %60 = tpu.matmul %58, %59, %cst_72 {dimension_numbers = #tpu.dot_dimension_numbers<[1], [0], [0], [1], [0, 0, 1, 1], [], []>} : vector<32x101xbf16>, vector<101x384xbf16>, vector<32x384xf32> -> vector<32x384xf32>
    %c0_73 = arith.constant 0 : index
    %c0_74 = arith.constant 0 : index
    %c0_75 = arith.constant 0 : index
    %61 = vector.load %arg4[%c0_73, %c0_74, %c0_75] : memref<1x32x384xf32, #tpu.memory_space<vmem>>, vector<1x32x384xf32>
    %62 = vector.shape_cast %61 : vector<1x32x384xf32> to vector<32x384xf32>
    %63 = vector.shape_cast %60 : vector<32x384xf32> to vector<1x32x384xf32>
    tpu.vector_store %arg4[%c0_73, %c0_74, %c0_75], %63 {strides = array<i32>} : memref<1x32x384xf32, #tpu.memory_space<vmem>>, vector<1x32x384xf32>,
    return
  }
  func.func @transform_0(%arg0: i32) -> (i32, i32, i32) {
    %c0_i32 = arith.constant 0 : i32
    %c0_i32_0 = arith.constant 0 : i32
    %c0_i32_1 = arith.constant 0 : i32
    return %arg0, %c0_i32, %c0_i32_0 : i32, i32, i32
  }
  func.func @transform_1(%arg0: i32) -> (i32, i32) {
    %c0_i32 = arith.constant 0 : i32
    %c0_i32_0 = arith.constant 0 : i32
    %c0_i32_1 = arith.constant 0 : i32
    return %c0_i32, %c0_i32_0 : i32, i32
  }
  func.func @transform_2(%arg0: i32) -> (i32, i32) {
    %c0_i32 = arith.constant 0 : i32
    %c0_i32_0 = arith.constant 0 : i32
    %c0_i32_1 = arith.constant 0 : i32
    return %c0_i32, %c0_i32_0 : i32, i32
  }
  func.func @transform_3(%arg0: i32) -> (i32, i32, i32) {
    %c0_i32 = arith.constant 0 : i32
    %c0_i32_0 = arith.constant 0 : i32
    %c0_i32_1 = arith.constant 0 : i32
    return %arg0, %c0_i32, %c0_i32_0 : i32, i32, i32
  }
}

</mosaic_0001>

<bundles_post_ra>
// kernel: tpu_custom_call.1
= control target key start
LH: loop header
LB: loop body
LE: loop exit
PB: predicated region body
PF: predicated region fallthrough
CT: control target
= control target key end

     0   :  { %8 = vsyncpa [#allocation5], 0  ;;  %s2160_s0 = inlined_call_operand.hbm [shape: f32[2,4,512], index: 0, kind: input, shape index: {}]   ;;  %s2161_s1 = inlined_call_operand.hbm [shape: f32[4,512], index: 1, kind: input, shape index: {}]   ;;  %s2162_s2 = inlined_call_operand.hbm [shape: bf16[32,101], index: 2, kind: input, shape index: {}]   ;;  %s2163_s3 = inlined_call_operand.hbm [shape: f32[2,32,384], index: 3, kind: output, shape index: {}]  }
   0x1   :  { %10 = vsyncpa [#allocation5 + $0x1], 0 }
   0x2   :  { %11 = vsyncpa [#allocation8], 0 }
   0x3   :  { %12 = vsyncpa [#allocation6], 0 }
   0x4   :  { %14 = vsyncpa [#allocation6 + $0x1], 0  ;;  %s1837_s12 = smov 0   ;;  %s1839_s13 = smov 0  }
   0x5   :  { %s1841_s14 = smov 0   ;;  %s1843_s15 = smov 0  }
   0x6 LB: > { %s1858_s16 = sadd.s32 4294967295, %s1780_s15   ;;  %s1418_s17 = sadd.s32 4294967294, %s1780_s15   ;;  %s1780_s15 = sphi %s1843_s15, %s2183_s15   ;;  %s1776_s14 = sphi %s1841_s14, %s2182_s14   ;;  %s1772_s13 = sphi %s1839_s13, %s2181_s13   ;;  %s1768_s12 = sphi %s1837_s12, %s2180_s12  }
   0x7   : > { %p40_p0 = scmp.ne.s32.totalorder %s1772_s13, %s1768_s12  ;;  %p2164_p1 = scmp.eq.s32.totalorder %s1858_s16, 0 }
   0x8   : > { %p112_p3 = scmp.eq.s32.totalorder %s1418_s17, 1  ;;  %p1419_p5 = scmp.ge.s32.totalorder %s1780_s15, 1 }
   0x9   : > { %p1867_p4 = por %p2164_p1, %p40_p0  ;;  %p119_p7 = scmp.lt.s32.totalorder %s1780_s15, 3 }
   0xa   : > { %p1872_p6 = por %p112_p3, %p40_p0  ;;  %s1782_s21 = smov [#allocation7]  }
   0xb   : > { %s2167_s18 = scalar_select %p1867_p4, 1, 0 }
   0xc   : > { %s2168_s19 = scalar_select %p1872_p6, 1, 0 }
   0xd   : > { %p1877_p8 = pnand %p1419_p5, %p119_p7  ;;  %s132_s22 = sshll.u32 %s1782_s21, 4  ;;  %s133_s22 = int_to_ptr.vmem [resolvable:$true] %s132_s22 }
   0xe   : > { %s1783_s23 = smov [#allocation9]   ;;  %s1624_s28 = scalar_lea.hbm %s2161_s1, 256 }
   0xf   : > { %s2169_s20 = scalar_select %p1877_p8, 1, 0 }
  0x10   : > { %p1506_p10 = pneg %p1877_p8  ;;  %s142_s24 = sshll.u32 %s1783_s23, 4  ;;  %s1890_s24 = int_to_ptr.vmem [resolvable:$true] %s142_s24 }
  0x11   : > { %p1625_p12 = scmp.ne.s32.totalorder %s2161_s1, %s1624_s28  ;;  %p1631_p5 = scmp.lt.u32.totalorder %s1624_s28, %s2161_s1 }
  0x12   : > { %p1886_p11 = pnand %p1506_p10, %p2164_p1 }
  0x14   : > { %p1626_p13 = pneg %p1886_p11 }
  0x16   : > { %p1627_p0 = pnand %p1626_p13, %p1625_p12 }
  0x18   : > { %p1628_p3 = pneg %p1627_p0 }
  0x1a   : > { %p1633_p7 = pnand %p1631_p5, %p1628_p3 }
  0x1c   : > { %1636 = shalt.err (!%p1633_p7)
}
  0x1d   : > { %s1637_s6 = scalar_lea.vmem %s133_s22, 256  ;;  %p1645_p2 = scmp.lt.s32.totalorder %s133_s22, %s133_s22 }
  0x1e   : > { %p1638_p10 = scmp.ne.s32.totalorder %s133_s22, %s1637_s6  ;;  %p1646_p6 = scmp.lt.s32.totalorder %s1637_s6, %s1637_s6 }
  0x20   : > { %p1640_p9 = pnand %p1638_p10, %p1626_p13  ;;  %p1647_p4 = por %p1646_p6, %p1645_p2 }
  0x22   : > { %p1641_p1 = pneg %p1640_p9 }
  0x24   : > { %p1648_p8 = pnand %p1647_p4, %p1641_p1 }
  0x26   : > { %1651 = shalt.err (!%p1648_p8)
}
  0x27   : > { %1509 = dma.hbm_to_vmem [thread:$0]  (!%p1886_p11), %s2161_s1, 256, %s133_s22, [#allocation8]  }
  0x28   : > { %s1652_s11 = scalar_lea.hbm %s2162_s2, 256 }
  0x29   : > { %p1653_p9 = scmp.ne.s32.totalorder %s2162_s2, %s1652_s11  ;;  %p1659_p4 = scmp.lt.u32.totalorder %s1652_s11, %s2162_s2 }
  0x2b   : > { %p1655_p2 = pnand %p1653_p9, %p1626_p13 }
  0x2d   : > { %p1656_p1 = pneg %p1655_p2 }
  0x2f   : > { %p1661_p6 = pnand %p1659_p4, %p1656_p1 }
  0x31   : > { %1664 = shalt.err (!%p1661_p6)
}
  0x32   : > { %s1665_s22 = scalar_lea.vmem %s1890_s24, 256  ;;  %p1673_p3 = scmp.lt.s32.totalorder %s1890_s24, %s1890_s24 }
  0x33   : > { %p1666_p8 = scmp.ne.s32.totalorder %s1890_s24, %s1665_s22  ;;  %p1674_p5 = scmp.lt.s32.totalorder %s1665_s22, %s1665_s22 }
  0x35   : > { %p1668_p12 = pnand %p1666_p8, %p1626_p13  ;;  %p1675_p7 = por %p1674_p5, %p1673_p3 }
  0x37   : > { %p1669_p0 = pneg %p1668_p12 }
  0x39   : > { %p1676_p10 = pnand %p1675_p7, %p1669_p0 }
  0x3b   : > { %1679 = shalt.err (!%p1676_p10)
}
  0x3c   : > { %s1784_s27 = smov 64   ;;  %s1785_s28 = smov 4  }
  0x3d   : > { %1512 = dma.hbm_to_vmem [thread:$0]  (!%p1886_p11), %s2162_s2, 256, %s1890_s24, [#allocation8], %s1784_s27, %s1784_s27, %s1785_s28  }
  0x3e   : > { %s1940_s4 = sadd.s32 1, %s1780_s15   ;;  %s27_s5 = sadd.s32 1, %s1776_s14 }
  0x3f   : > { %s24_s6 = ssub.s32 %s1780_s15, %s1940_s4  ;;  %p34_p13 = scmp.ne.s32.totalorder %s1776_s14, %s1772_s13 }
  0x40   : > { %p25_p9 = scmp.eq.s32.totalorder %s24_s6, 0  ;;  %p35_p2 = scmp.eq.s32.totalorder %s1780_s15, 0 }
  0x41   : > { %p2171_p1 = scmp.eq.s32.totalorder %s1858_s16, 1  ;;  %p1523_p6 = scmp.lt.s32.totalorder %s1780_s15, 2 }
  0x42   : > { %s1956_s8 = scalar_select %p25_p9, %s1776_s14, %s27_s5  }
  0x43   : > { %p1950_p4 = por %p2171_p1, %p34_p13  ;;  %p36_p8 = por %p35_p2, %p34_p13 }
  0x44   : > { %s156_s25 = sand.u32 1, %s1776_s14   ;;  %s1464_s24 = sshll.u32 %s1780_s15, 8 }
  0x45   : > { %s1423_s9 = sshll.u32 %s156_s25, 4  ;;  %s1963_s17 = scalar_lea.hbm %s2160_s0, %s1464_s24 }
  0x46   : > { %s160_s21 = scalar_lea.vmem [#allocation4], %s1423_s9  ;;  %p1967_p11 = pnand %p1523_p6, %p36_p8 }
  0x47   : > { %s168_s23 = sshll.u32 %s160_s21, 4  ;;  %s157_s22 = scalar_lea.sflag [#allocation5], %s156_s25  ;;  %s1965_s23 = int_to_ptr.vmem [resolvable:$true] %s168_s23 }
  0x48   : > { %s1680_s27 = scalar_lea.hbm %s1963_s17, 256  ;;  %p1682_p0 = pneg %p1967_p11 }
  0x49   : > { %p1681_p12 = scmp.ne.s32.totalorder %s1963_s17, %s1680_s27  ;;  %s1685_s30 = scalar_lea.hbm %s2160_s0, 512 }
  0x4a   : > { %p1686_p7 = scmp.lt.u32.totalorder %s1963_s17, %s2160_s0  ;;  %p1687_p10 = scmp.lt.u32.totalorder %s1685_s30, %s1680_s27 }
  0x4b   : > { %p1683_p3 = pnand %p1682_p0, %p1681_p12  ;;  %p1689_p9 = scmp.lt.u32.totalorder %s1680_s27, %s1963_s17 }
  0x4c   : > { %p1688_p13 = por %p1687_p10, %p1686_p7 }
  0x4d   : > { %p1684_p5 = pneg %p1683_p3 }
  0x4e   : > { %p1690_p2 = por %p1689_p9, %p1688_p13 }
  0x50   : > { %p1691_p1 = pnand %p1690_p2, %p1684_p5 }
  0x52   : > { %1694 = shalt.err (!%p1691_p1)
}
  0x53   : > { %s1695_s25 = scalar_lea.vmem %s1965_s23, 256  ;;  %s1786_s9 = smov [#allocation4]  }
  0x54   : > { %p1696_p6 = scmp.ne.s32.totalorder %s1965_s23, %s1695_s25  ;;  %s1700_s24 = sshll.u32 %s1786_s9, 4  ;;  %s1701_s24 = int_to_ptr.vmem [resolvable:$false] %s1700_s24 }
  0x55   : > { %s1702_s10 = scalar_lea.vmem %s1701_s24, 512  ;;  %p1703_p3 = scmp.lt.s32.totalorder %s1965_s23, %s1701_s24 }
  0x56   : > { %p1698_p8 = pnand %p1696_p6, %p1682_p0  ;;  %p1704_p7 = scmp.lt.s32.totalorder %s1702_s10, %s1695_s25 }
  0x58   : > { %p1699_p12 = pneg %p1698_p8  ;;  %p1705_p10 = por %p1704_p7, %p1703_p3 }
  0x5a   : > { %p1706_p13 = pnand %p1705_p10, %p1699_p12 }
  0x5c   : > { %1709 = shalt.err (!%p1706_p13)
}
  0x5d   : > { %1516 = dma.hbm_to_vmem [thread:$0]  (!%p1967_p11), %s1963_s17, 256, %s1965_s23, %s157_s22  }
  0x5e   : > { %p2174_p5 = scmp.ne.s32.totalorder %s2169_s20, 0 }
  0x5f   : > { %s1999_s11 = sand.u32 (!%p2174_p5), 1, %s1772_s13   ;;  %p2175_p0 = scmp.ne.s32.totalorder (!%p2174_p5), %s2167_s18, 0 }
  0x60   : > { %177 = sbr.rel (%p2174_p5) target bundleno = 586 (0x24a), region = 32  ;;  %s1427_s21 = sshll.u32 (!%p2174_p5), %s1999_s11, 4 }
  0x61   : > { %s180_s27 = scalar_lea.sflag (!%p2174_p5), [#allocation5], %s1999_s11  ;;  %s183_s28 = scalar_lea.vmem (!%p2174_p5), [#allocation4], %s1427_s21 }
  0x67   : > { %1755 = dma.done.wait (%p2175_p0), %s180_s27, 256  }
  0x68   : > { %1757 = vsyncadd (%p2175_p0), %s180_s27, 4294967040  ;;  %p2176_p9 = scmp.eq.s32.totalorder %s1858_s16, 0 }
  0x6a   : > { %1759 = dma.done.wait (%p2176_p9), [#allocation8], 512   ;;  %p2177_p11 = pmov %p2176_p9 }
  0x6b   : > { %v1787_v0 = vmov 1983009808   ;;  %v254_v2 = vlaneseq  ;;  %v229_v5 = vld [vmem:[%s183_s28] sm:$0xff]  ;;  %v230_v6 = vld [vmem:[%s183_s28 + $0x8] sm:$0xff]  ;;  %s1788_s18 = smov 126   ;;  %s1789_s20 = smov 127  }
  0x6c   : > { %1761 = vsyncadd (%p2177_p11), [#allocation8], 4294966784  ;;  %v252_v1 = vunpack.c.l.s4 %v1787_v0  ;;  %v231_v7 = vld [vmem:[#allocation7] sm:$0xff]  ;;  %v232_v8 = vld [vmem:[#allocation7 + $0x8] sm:$0xff]  ;;  %s1790_s17 = smov 125   ;;  %s1791_s23 = smov 124  }
  0x6d   : > { %v255_v4 = vshrl.u32 %v254_v2, 7  ;;  %v233_v9 = vsub.f32 %v229_v5, %v231_v7  ;;  %v234_v10 = vsub.f32 %v230_v6, %v232_v8  ;;  %s1792_s26 = smov 104   ;;  %s1793_s22 = smov 103   ;;  %vm216_vm0 = vcmask 1042434   ;;  %v226_v26 = vld [vmem:[#allocation2 + $0x98] sm:$0x4] }
  0x6e   : > { %v253_v3 = vunpack.c.0.s8 %v252_v1  ;;  %s1794_s29 = smov 102   ;;  %s1795_s30 = smov 101   ;;  %vm217_vm1 = vsmask.f32 2304  ;;  %vm219_vm2 = vcmask 1046534   ;;  %v2065_v30 = vld [vmem:[#allocation9] sm:$0xff]  }
  0x6f   : > { %v237_v11 = vcombine.high %v233_v9, %v233_v9  ;;  %v238_v13 = vcombine.high %v234_v10, %v234_v10  ;;  %s1796_s5 = smov 100   ;;  %s1797_s6 = smov 80   ;;  %vm218_vm3 = vmand %vm216_vm0, %vm217_vm1  ;;  %vm220_vm4 = vsmask.f32 6400  ;;  %v223_v28 = vld [vmem:[#allocation2 + $0x90] sm:$0x44] }
  0x70   : > { %v256_v12 = vsub.s32 %v253_v3, %v255_v4  ;;  %s1798_s25 = smov 79   ;;  %s1799_s9 = smov 78   ;;  %v227_v27 = vsel %vm218_vm3, 1065369472, %v226_v26  ;;  %vm221_vm5 = vmand %vm219_vm2, %vm220_vm4  ;;  %vm531_vm7 = vcmask 826368   ;;  %v1812_v31 = vmov 0  }
  0x71   : > { %v1430_v14 = vpack.c.bf16 %v237_v11, %v233_v9  ;;  %v1431_v15 = vpack.c.bf16 %v238_v13, %v234_v10  ;;  %s1800_s24 = smov 77   ;;  %s1801_s10 = smov 76   ;;  %228 = vst [vmem:[#allocation2 + $0x98] sm:$0x4] %v227_v27  ;;  %vm222_vm6 = vmor %vm221_vm5, %vm218_vm3  ;;  %1230 = vmatprep.mubr.bf16.mxu0 %v1812_v31  ;;  %1488 = vmatprep.mubr.msk.bf16.mxu1 %vm531_vm7, %v2065_v30  ;;  %vm314_vm8 = vcmask 1039360   ;;  %vm376_vm9 = vcmask 1022976  }
  0x72   : > { %s1802_s21 = smov 56   ;;  %s1803_s27 = smov 55   ;;  %v224_v29 = vsel %vm222_vm6, 1065369472, %v223_v28  ;;  %vm438_vm10 = vcmask 850944   ;;  %vm500_vm11 = vcmask 834560  }
  0x73   : > { %v257_v16 = vrot.slane %v1430_v14, %v256_v12  ;;  %v264_v17 = vrot.slane %v1431_v15, %v256_v12  ;;  %s1804_s28 = smov 54   ;;  %225 = vst [vmem:[#allocation2 + $0x90] sm:$0x44] %v224_v29  ;;  %vm312_vm12 = vcmask 1043456   ;;  %vm345_vm13 = vcmask 1031168  }
  0x74   : > { %vm407_vm14 = vcmask 1014784   ;;  %vm469_vm15 = vcmask 842752   ;;  %vm562_vm0 = vcmask 818176   ;;  %vm593_vm1 = vcmask 654336  }
  0x75   : > { %v265_v18 = vcombine.low %v257_v16, %v264_v17  ;;  %v1622_v22 = vcombine.low %v264_v17, %v264_v17  ;;  %v1623_v23 = vcombine.low %v257_v16, %v257_v16  ;;  %vm624_vm2 = vcmask 646144  }
  0x76   : > { %vm655_vm3 = vcmask 637952   ;;  %vm686_vm4 = vcmask 629760   ;;  %vm717_vm5 = vcmask 621568   ;;  %vm748_vm6 = vcmask 457728  }
  0x77   : > { %267 = vst [vmem:[#allocation3] sm:$0xff] %v265_v18  ;;  %v2011_v19 = vrot.slane %v265_v18, %v256_v12  ;;  %v2021_v24 = vrot.slane %v1622_v22, %v256_v12  ;;  %v2023_v25 = vrot.slane %v1623_v23, %v256_v12 }
  0x79   : > { %338 = vrot.lane.b32.xlu1 %v2011_v19, %s1788_s18  ;;  %308 = vrot.lane.b32.xlu0 %v2011_v19, %s1789_s20 }
  0x7d   : > { %371 = vrot.lane.b32.xlu1 %v2011_v19, %s1790_s17  ;;  %400 = vrot.lane.b32.xlu0 %v2011_v19, %s1791_s23 }
  0x7e   : > { %v268_v20 = vld [vmem:[#allocation3] sm:$0x3f] }
  0x7f   : > { %v270_v21 = vcombine.high %v268_v20, %v268_v20  ;;  %1432 = vst.sshfl [vmem:[#allocation2] sm:$0xf pattern:$0x76325410] %v268_v20 }
  0x81   : > { %433 = vrot.lane.b32.xlu1 %v2011_v19, %s1792_s26  ;;  %462 = vrot.lane.b32.xlu0 %v2011_v19, %s1793_s22  ;;  %1433 = vst.sshfl [vmem:[#allocation2 + $0x8] sm:$0x3 pattern:$0x76325410] %v270_v21 }
  0x85   : > { %495 = vrot.lane.b32.xlu1 %v2011_v19, %s1794_s29  ;;  %524 = vrot.lane.b32.xlu0 %v2011_v19, %s1795_s30 }
  0x89   : > { %340 = vrot.lane.b32.xlu1 %v2021_v24, %s1788_s18  ;;  %306 = vrot.lane.b32.xlu0 %v2023_v25, %s1789_s20  ;;  %s1805_s18 = smov 53   ;;  %s1806_s20 = smov 52  }
  0x8d   : > { %402 = vrot.lane.b32.xlu1 %v2021_v24, %s1791_s23  ;;  %369 = vrot.lane.b32.xlu0 %v2023_v25, %s1790_s17  ;;  %s1807_s17 = smov 32   ;;  %s1808_s23 = smov 31  }
  0x91   : > { %464 = vrot.lane.b32.xlu1 %v2021_v24, %s1793_s22  ;;  %431 = vrot.lane.b32.xlu0 %v2023_v25, %s1792_s26  ;;  %s1809_s26 = smov 30   ;;  %s1810_s22 = smov 29  }
  0x95   : > { %526 = vrot.lane.b32.xlu1 %v2021_v24, %s1795_s30  ;;  %493 = vrot.lane.b32.xlu0 %v2023_v25, %s1794_s29  ;;  %s1811_s29 = smov 28   ;;  %s1492_s30 = smul.u32 96, %s1999_s11 }
  0x99   : > { %557 = vrot.lane.b32.xlu1 %v2011_v19, %s1796_s5  ;;  %555 = vrot.lane.b32.xlu0 %v2023_v25, %s1796_s5  ;;  %s213_s5 = scalar_lea.vmem [#allocation10], %s1492_s30 }
  0x9d   : > { %588 = vrot.lane.b32.xlu1 %v2021_v24, %s1797_s6  ;;  %586 = vrot.lane.b32.xlu0 %v2011_v19, %s1797_s6  ;;  %s1493_s6 = smul.u32 1536, %s1858_s16  ;;  %s1313_s16 = scalar_lea.sflag [#allocation6], %s1999_s11 }
  0xa1   : > { %619 = vrot.lane.b32.xlu1 %v2011_v19, %s1798_s25  ;;  %617 = vrot.lane.b32.xlu0 %v2023_v25, %s1798_s25  ;;  %s1326_s25 = sshll.u32 %s213_s5, 4  ;;  %s2116_s25 = int_to_ptr.vmem [resolvable:$true] %s1326_s25 }
  0xa5   : > { %650 = vrot.lane.b32.xlu1 %v2021_v24, %s1799_s9  ;;  %648 = vrot.lane.b32.xlu0 %v2011_v19, %s1799_s9 }
  0xa9   : > { %681 = vrot.lane.b32.xlu1 %v2011_v19, %s1800_s24  ;;  %679 = vrot.lane.b32.xlu0 %v2023_v25, %s1800_s24 }
  0xad   : > { %712 = vrot.lane.b32.xlu1 %v2021_v24, %s1801_s10  ;;  %710 = vrot.lane.b32.xlu0 %v2011_v19, %s1801_s10  ;;  %s2114_s10 = scalar_lea.hbm %s2163_s3, %s1493_s6 }
  0xb1   : > { %743 = vrot.lane.b32.xlu1 %v2011_v19, %s1802_s21  ;;  %741 = vrot.lane.b32.xlu0 %v2023_v25, %s1802_s21  ;;  %s1710_s21 = scalar_lea.vmem %s2116_s25, 1536 }
  0xb2   : > { %p1711_p2 = scmp.ne.s32.totalorder %s2116_s25, %s1710_s21 }
  0xb4   : > { %p1712_p1 = pnand %p1711_p2, %p1950_p4 }
  0xb5   : > { %774 = vrot.lane.b32.xlu1 %v2021_v24, %s1803_s27  ;;  %772 = vrot.lane.b32.xlu0 %v2011_v19, %s1803_s27  ;;  %s1814_s27 = smov [#allocation10]  }
  0xb6   : > { %p1713_p6 = pneg %p1712_p1 }
  0xb9   : > { %805 = vrot.lane.b32.xlu1 %v2011_v19, %s1804_s28  ;;  %803 = vrot.lane.b32.xlu0 %v2023_v25, %s1804_s28  ;;  %s1714_s28 = sshll.u32 %s1814_s27, 4  ;;  %s1715_s28 = int_to_ptr.vmem [resolvable:$false] %s1714_s28 }
  0xba   : > { %p1717_p8 = scmp.lt.s32.totalorder %s2116_s25, %s1715_s28 }
  0xbd   : > { %836 = vrot.lane.b32.xlu1 %v2021_v24, %s1805_s18  ;;  %834 = vrot.lane.b32.xlu0 %v2011_v19, %s1805_s18  ;;  %s1716_s18 = scalar_lea.vmem %s1715_s28, 3072 }
  0xbe   : > { %p1718_p12 = scmp.lt.s32.totalorder %s1716_s18, %s1710_s21 }
  0xc0   : > { %p1719_p3 = por %p1718_p12, %p1717_p8 }
  0xc1   : > { %867 = vrot.lane.b32.xlu1 %v2011_v19, %s1806_s20  ;;  %865 = vrot.lane.b32.xlu0 %v2023_v25, %s1806_s20 }
  0xc2   : > { %p1720_p7 = pnand %p1719_p3, %p1713_p6 }
  0xc5   : > { %898 = vrot.lane.b32.xlu1 %v2021_v24, %s1807_s17  ;;  %896 = vrot.lane.b32.xlu0 %v2011_v19, %s1807_s17 }
  0xc9   : > { %929 = vrot.lane.b32.xlu1 %v2011_v19, %s1808_s23  ;;  %927 = vrot.lane.b32.xlu0 %v2023_v25, %s1808_s23 }
  0xcd   : > { %960 = vrot.lane.b32.xlu1 %v2021_v24, %s1809_s26  ;;  %958 = vrot.lane.b32.xlu0 %v2011_v19, %s1809_s26 }
  0xd1   : > { %991 = vrot.lane.b32.xlu1 %v2011_v19, %s1810_s22  ;;  %989 = vrot.lane.b32.xlu0 %v2023_v25, %s1810_s22 }
  0xd5   : > { %1022 = vrot.lane.b32.xlu1 %v2021_v24, %s1811_s29  ;;  %1020 = vrot.lane.b32.xlu0 %v2011_v19, %s1811_s29 }
  0xeb   : > { %v339_v32 = vpop.permute.xlu1 %338  ;;  %v309_v33 = vpop.permute.xlu0 %308 }
  0xec   : > { %v311_v34 = vrot.slane %v309_v33, 4  ;;  %v342_v50 = vrot.slane %v339_v32, 4 }
  0xee   : > { %v316_v35 = vsel %vm314_vm8, %v309_v33, %v311_v34 }
  0xef   : > { %320 = vst [vmem:[#allocation2 + $0x8] sm:$0xc] %v316_v35  ;;  %v372_v36 = vpop.permute.xlu1 %371  ;;  %v401_v37 = vpop.permute.xlu0 %400 }
  0xf0   : > { %v374_v38 = vrot.slane %v372_v36, 4  ;;  %v404_v60 = vrot.slane %v401_v37, 4 }
  0xf2   : > { %v378_v39 = vsel %vm376_vm9, %v372_v36, %v374_v38 }
  0xf3   : > { %382 = vst [vmem:[#allocation2 + $0x14] sm:$0xc] %v378_v39  ;;  %v434_v40 = vpop.permute.xlu1 %433  ;;  %v463_v41 = vpop.permute.xlu0 %462 }
  0xf4   : > { %v436_v42 = vrot.slane %v434_v40, 4  ;;  %v466_v6 = vrot.slane %v463_v41, 4 }
  0xf6   : > { %v440_v43 = vsel %vm438_vm10, %v434_v40, %v436_v42 }
  0xf7   : > { %444 = vst [vmem:[#allocation2 + $0x20] sm:$0xc] %v440_v43  ;;  %v496_v44 = vpop.permute.xlu1 %495  ;;  %v525_v45 = vpop.permute.xlu0 %524 }
  0xf8   : > { %v498_v46 = vrot.slane %v496_v44, 4  ;;  %v528_v17 = vrot.slane %v525_v45, 4 }
  0xfa   : > { %v502_v47 = vsel %vm500_vm11, %v496_v44, %v498_v46 }
  0xfb   : > { %506 = vst [vmem:[#allocation2 + $0x2c] sm:$0xc] %v502_v47  ;;  %v341_v48 = vpop.permute.xlu1 %340  ;;  %v307_v49 = vpop.permute.xlu0 %306 }
  0xfc   : > { %v343_v51 = vrot.slane %v341_v48, 4  ;;  %v310_v52 = vrot.slane %v307_v49, 4 }
  0xfe   : > { %v344_v53 = vsel %vm312_vm12, %v342_v50, %v343_v51  ;;  %v347_v54 = vsel %vm345_vm13, %v341_v48, %v343_v51  ;;  %v313_v55 = vsel %vm312_vm12, %v310_v52, %v311_v34 }
  0xff   : > { %v346_v56 = vsel %vm345_vm13, %v339_v32, %v344_v53  ;;  %351 = vst [vmem:[#allocation2 + $0x14] sm:$0x3] %v347_v54  ;;  %v315_v57 = vsel %vm314_vm8, %v307_v49, %v313_v55  ;;  %v403_v58 = vpop.permute.xlu1 %402  ;;  %v370_v59 = vpop.permute.xlu0 %369  ;;  %vm779_vm8 = vcmask 449536   ;;  %vm903_vm13 = vcmask 261120  }
 0x100   : > { %350 = vst [vmem:[#allocation2 + $0xc] sm:$0x33] %v346_v56  ;;  %319 = vst [vmem:[#allocation2] sm:$0xcc] %v315_v57  ;;  %v405_v61 = vrot.slane %v403_v58, 4  ;;  %v373_v62 = vrot.slane %v370_v59, 4 }
 0x102   : > { %v406_v63 = vsel %vm312_vm12, %v404_v60, %v405_v61  ;;  %v409_v0 = vsel %vm407_vm14, %v403_v58, %v405_v61  ;;  %v375_v1 = vsel %vm312_vm12, %v373_v62, %v374_v38 }
 0x103   : > { %v408_v2 = vsel %vm407_vm14, %v401_v37, %v406_v63  ;;  %413 = vst [vmem:[#allocation2 + $0x20] sm:$0x3] %v409_v0  ;;  %v377_v3 = vsel %vm376_vm9, %v370_v59, %v375_v1  ;;  %v465_v4 = vpop.permute.xlu1 %464  ;;  %v432_v5 = vpop.permute.xlu0 %431  ;;  %vm810_vm9 = vcmask 441344   ;;  %vm934_vm14 = vcmask 252928  }
 0x104   : > { %412 = vst [vmem:[#allocation2 + $0x18] sm:$0x33] %v408_v2  ;;  %381 = vst [vmem:[#allocation2 + $0xc] sm:$0xcc] %v377_v3  ;;  %v467_v7 = vrot.slane %v465_v4, 4  ;;  %v435_v8 = vrot.slane %v432_v5, 4 }
 0x106   : > { %v468_v9 = vsel %vm312_vm12, %v466_v6, %v467_v7  ;;  %v471_v10 = vsel %vm469_vm15, %v465_v4, %v467_v7  ;;  %v437_v11 = vsel %vm312_vm12, %v435_v8, %v436_v42  ;;  %v1593_v12 = vld [vmem:[#allocation2 + $0x8] ss:$12 sps:$4 sm:$0xff]  }
 0x107   : > { %v470_v13 = vsel %vm469_vm15, %v463_v41, %v468_v9  ;;  %475 = vst [vmem:[#allocation2 + $0x2c] sm:$0x3] %v471_v10  ;;  %v439_v14 = vsel %vm438_vm10, %v432_v5, %v437_v11  ;;  %v527_v15 = vpop.permute.xlu1 %526  ;;  %v494_v16 = vpop.permute.xlu0 %493  ;;  %1474 = vmatprep.subr.bf16.mxu1 %v1593_v12  ;;  %vm841_vm10 = vcmask 433152   ;;  %vm965_vm15 = vcmask 244736  }
 0x108   : > { %474 = vst [vmem:[#allocation2 + $0x24] sm:$0x33] %v470_v13  ;;  %443 = vst [vmem:[#allocation2 + $0x18] sm:$0xcc] %v439_v14  ;;  %v529_v18 = vrot.slane %v527_v15, 4  ;;  %v497_v19 = vrot.slane %v494_v16, 4  ;;  %1475 = vmatpush3.bf16.msra.mxu1 %v1593_v12 }
 0x10a   : > { %v530_v20 = vsel %vm312_vm12, %v528_v17, %v529_v18  ;;  %v533_v21 = vsel %vm531_vm7, %v527_v15, %v529_v18  ;;  %v499_v22 = vsel %vm312_vm12, %v497_v19, %v498_v46 }
 0x10b   : > { %v532_v23 = vsel %vm531_vm7, %v525_v45, %v530_v20  ;;  %537 = vst [vmem:[#allocation2 + $0x38] sm:$0x3] %v533_v21  ;;  %v501_v24 = vsel %vm500_vm11, %v494_v16, %v499_v22  ;;  %v558_v25 = vpop.permute.xlu1 %557  ;;  %v556_v26 = vpop.permute.xlu0 %555  ;;  %v1594_v27 = vld [vmem:[#allocation2 + $0x4] ss:$12 sps:$4 sm:$0xff]   ;;  %v1596_v28 = vld [vmem:[#allocation2] ss:$12 sps:$4 sm:$0xff]  }
 0x10c   : > { %536 = vst [vmem:[#allocation2 + $0x30] sm:$0x33] %v532_v23  ;;  %505 = vst [vmem:[#allocation2 + $0x24] sm:$0xcc] %v501_v24  ;;  %v560_v29 = vrot.slane %v558_v25, 4  ;;  %v559_v32 = vrot.slane %v556_v26, 4  ;;  %1198 = vmatprep.subr.bf16.mxu0 %v1594_v27 }
 0x10d   : > { %1199 = vmatpush1.bf16.msra.mxu0 %v1596_v28  ;;  %vm872_vm11 = vcmask 424960  }
 0x10e   : > { %v564_v33 = vsel %vm562_vm0, %v558_v25, %v560_v29  ;;  %v561_v34 = vsel %vm312_vm12, %v559_v32, %v560_v29  ;;  %v1597_v35 = vld [vmem:[#allocation2 + $0x20] ss:$12 sps:$4 sm:$0xff]  }
 0x10f   : > { %568 = vst [vmem:[#allocation2 + $0x38] sm:$0xc] %v564_v33  ;;  %v563_v36 = vsel %vm562_vm0, %v556_v26, %v561_v34  ;;  %v589_v37 = vpop.permute.xlu1 %588  ;;  %v587_v38 = vpop.permute.xlu0 %586  ;;  %1476 = vmatprep.subr.bf16.mxu1 %v1597_v35  ;;  %vm996_vm0 = vcmask 236544  }
 0x110   : > { %567 = vst [vmem:[#allocation2 + $0x30] sm:$0xcc] %v563_v36  ;;  %v591_v39 = vrot.slane %v589_v37, 4  ;;  %v590_v40 = vrot.slane %v587_v38, 4  ;;  %1477 = vmatpush3.bf16.msra.mxu1 %v1597_v35 }
 0x112   : > { %v595_v41 = vsel %vm593_vm1, %v589_v37, %v591_v39  ;;  %v592_v42 = vsel %vm312_vm12, %v590_v40, %v591_v39 }
 0x113   : > { %599 = vst [vmem:[#allocation2 + $0x44] sm:$0x3] %v595_v41  ;;  %v594_v43 = vsel %vm593_vm1, %v587_v38, %v592_v42  ;;  %v620_v44 = vpop.permute.xlu1 %619  ;;  %v618_v45 = vpop.permute.xlu0 %617  ;;  %v1598_v46 = vld [vmem:[#allocation2 + $0x1c] ss:$12 sps:$4 sm:$0xff]   ;;  %v1600_v47 = vld [vmem:[#allocation2 + $0x18] ss:$12 sps:$4 sm:$0xff]  }
 0x114   : > { %598 = vst [vmem:[#allocation2 + $0x3c] sm:$0x33] %v594_v43  ;;  %v622_v48 = vrot.slane %v620_v44, 4  ;;  %v621_v49 = vrot.slane %v618_v45, 4  ;;  %1200 = vmatprep.subr.bf16.mxu0 %v1598_v46  ;;  %vm1027_vm1 = vcmask 228352  }
 0x115   : > { %1201 = vmatpush1.bf16.msra.mxu0 %v1600_v47 }
 0x116   : > { %v626_v50 = vsel %vm624_vm2, %v620_v44, %v622_v48  ;;  %v623_v51 = vsel %vm312_vm12, %v621_v49, %v622_v48 }
 0x117   : > { %630 = vst [vmem:[#allocation2 + $0x44] sm:$0xc] %v626_v50  ;;  %v625_v52 = vsel %vm624_vm2, %v618_v45, %v623_v51  ;;  %v651_v53 = vpop.permute.xlu1 %650  ;;  %v649_v54 = vpop.permute.xlu0 %648  ;;  %vm1185_vm2 = vcmask 1041408  }
 0x118   : > { %629 = vst [vmem:[#allocation2 + $0x3c] sm:$0xcc] %v625_v52  ;;  %v653_v55 = vrot.slane %v651_v53, 4  ;;  %v652_v56 = vrot.slane %v649_v54, 4 }
 0x11a   : > { %v657_v57 = vsel %vm655_vm3, %v651_v53, %v653_v55  ;;  %v654_v58 = vsel %vm312_vm12, %v652_v56, %v653_v55 }
 0x11b   : > { %661 = vst [vmem:[#allocation2 + $0x50] sm:$0x3] %v657_v57  ;;  %v656_v59 = vsel %vm655_vm3, %v649_v54, %v654_v58  ;;  %v682_v60 = vpop.permute.xlu1 %681  ;;  %v680_v61 = vpop.permute.xlu0 %679  ;;  %vm1186_vm3 = vcmask 1042432  }
 0x11c   : > { %660 = vst [vmem:[#allocation2 + $0x48] sm:$0x33] %v656_v59  ;;  %v684_v62 = vrot.slane %v682_v60, 4  ;;  %v683_v63 = vrot.slane %v680_v61, 4 }
 0x11e   : > { %v688_v0 = vsel %vm686_vm4, %v682_v60, %v684_v62  ;;  %v685_v1 = vsel %vm312_vm12, %v683_v63, %v684_v62  ;;  %v1601_v2 = vld [vmem:[#allocation2 + $0x38] ss:$12 sps:$4 sm:$0xff]  }
 0x11f   : > { %692 = vst [vmem:[#allocation2 + $0x50] sm:$0xc] %v688_v0  ;;  %v687_v3 = vsel %vm686_vm4, %v680_v61, %v685_v1  ;;  %v713_v4 = vpop.permute.xlu1 %712  ;;  %v711_v5 = vpop.permute.xlu0 %710  ;;  %v1602_v6 = vld [vmem:[#allocation2 + $0x34] ss:$12 sps:$4 sm:$0xff]   ;;  %v1604_v7 = vld [vmem:[#allocation2 + $0x30] ss:$12 sps:$4 sm:$0xff]   ;;  %1478 = vmatprep.subr.bf16.mxu1 %v1601_v2 }
 0x120   : > { %691 = vst [vmem:[#allocation2 + $0x48] sm:$0xcc] %v687_v3  ;;  %v715_v8 = vrot.slane %v713_v4, 4  ;;  %v714_v9 = vrot.slane %v711_v5, 4  ;;  %1202 = vmatprep.subr.bf16.mxu0 %v1602_v6  ;;  %1479 = vmatpush3.bf16.msra.mxu1 %v1601_v2 }
 0x121   : > { %1203 = vmatpush1.bf16.msra.mxu0 %v1604_v7 }
 0x122   : > { %v719_v10 = vsel %vm717_vm5, %v713_v4, %v715_v8  ;;  %v716_v11 = vsel %vm312_vm12, %v714_v9, %v715_v8 }
 0x123   : > { %723 = vst [vmem:[#allocation2 + $0x5c] sm:$0x3] %v719_v10  ;;  %v718_v12 = vsel %vm717_vm5, %v711_v5, %v716_v11  ;;  %v744_v13 = vpop.permute.xlu1 %743  ;;  %v742_v14 = vpop.permute.xlu0 %741 }
 0x124   : > { %722 = vst [vmem:[#allocation2 + $0x54] sm:$0x33] %v718_v12  ;;  %v746_v15 = vrot.slane %v744_v13, 4  ;;  %v745_v16 = vrot.slane %v742_v14, 4 }
 0x126   : > { %v750_v17 = vsel %vm748_vm6, %v744_v13, %v746_v15  ;;  %v747_v18 = vsel %vm312_vm12, %v745_v16, %v746_v15 }
 0x127   : > { %754 = vst [vmem:[#allocation2 + $0x5c] sm:$0xc] %v750_v17  ;;  %v749_v19 = vsel %vm748_vm6, %v742_v14, %v747_v18  ;;  %v775_v20 = vpop.permute.xlu1 %774  ;;  %v773_v21 = vpop.permute.xlu0 %772 }
 0x128   : > { %753 = vst [vmem:[#allocation2 + $0x54] sm:$0xcc] %v749_v19  ;;  %v777_v22 = vrot.slane %v775_v20, 4  ;;  %v776_v23 = vrot.slane %v773_v21, 4 }
 0x12a   : > { %v781_v24 = vsel %vm779_vm8, %v775_v20, %v777_v22  ;;  %v778_v25 = vsel %vm312_vm12, %v776_v23, %v777_v22 }
 0x12b   : > { %785 = vst [vmem:[#allocation2 + $0x68] sm:$0x3] %v781_v24  ;;  %v780_v26 = vsel %vm779_vm8, %v773_v21, %v778_v25  ;;  %v806_v27 = vpop.permute.xlu1 %805  ;;  %v804_v28 = vpop.permute.xlu0 %803 }
 0x12c   : > { %784 = vst [vmem:[#allocation2 + $0x60] sm:$0x33] %v780_v26  ;;  %v808_v29 = vrot.slane %v806_v27, 4  ;;  %v807_v32 = vrot.slane %v804_v28, 4 }
 0x12e   : > { %v812_v33 = vsel %vm810_vm9, %v806_v27, %v808_v29  ;;  %v809_v34 = vsel %vm312_vm12, %v807_v32, %v808_v29  ;;  %v1605_v35 = vld [vmem:[#allocation2 + $0x50] ss:$12 sps:$4 sm:$0xff]  }
 0x12f   : > { %816 = vst [vmem:[#allocation2 + $0x68] sm:$0xc] %v812_v33  ;;  %v811_v36 = vsel %vm810_vm9, %v804_v28, %v809_v34  ;;  %v837_v37 = vpop.permute.xlu1 %836  ;;  %v835_v38 = vpop.permute.xlu0 %834  ;;  %v1606_v39 = vld [vmem:[#allocation2 + $0x4c] ss:$12 sps:$4 sm:$0xff]   ;;  %v1608_v40 = vld [vmem:[#allocation2 + $0x48] ss:$12 sps:$4 sm:$0xff]   ;;  %1480 = vmatprep.subr.bf16.mxu1 %v1605_v35 }
 0x130   : > { %815 = vst [vmem:[#allocation2 + $0x60] sm:$0xcc] %v811_v36  ;;  %v839_v41 = vrot.slane %v837_v37, 4  ;;  %v838_v42 = vrot.slane %v835_v38, 4  ;;  %1204 = vmatprep.subr.bf16.mxu0 %v1606_v39  ;;  %1481 = vmatpush3.bf16.msra.mxu1 %v1605_v35  ;;  %v1813_v28 = vmov 65535  }
 0x131   : > { %1205 = vmatpush1.bf16.msra.mxu0 %v1608_v40  ;;  %v1187_v29 = vsel %vm1185_vm2, 4294967295, %v1813_v28 }
 0x132   : > { %v843_v43 = vsel %vm841_vm10, %v837_v37, %v839_v41  ;;  %v840_v44 = vsel %vm312_vm12, %v838_v42, %v839_v41  ;;  %v1188_v34 = vsel %vm1186_vm3, %v1187_v29, 0  ;;  %v1621_v42 = vld [vmem:[#allocation9 + $0x8] sm:$0xff]  }
 0x133   : > { %847 = vst [vmem:[#allocation2 + $0x74] sm:$0x3] %v843_v43  ;;  %v842_v45 = vsel %vm841_vm10, %v835_v38, %v840_v44  ;;  %v868_v46 = vpop.permute.xlu1 %867  ;;  %v866_v47 = vpop.permute.xlu0 %865 }
 0x134   : > { %846 = vst [vmem:[#allocation2 + $0x6c] sm:$0x33] %v842_v45  ;;  %v870_v48 = vrot.slane %v868_v46, 4  ;;  %v869_v49 = vrot.slane %v866_v47, 4 }
 0x136   : > { %v874_v50 = vsel %vm872_vm11, %v868_v46, %v870_v48  ;;  %v871_v51 = vsel %vm312_vm12, %v869_v49, %v870_v48 }
 0x137   : > { %878 = vst [vmem:[#allocation2 + $0x74] sm:$0xc] %v874_v50  ;;  %v873_v52 = vsel %vm872_vm11, %v866_v47, %v871_v51  ;;  %v899_v53 = vpop.permute.xlu1 %898  ;;  %v897_v54 = vpop.permute.xlu0 %896 }
 0x138   : > { %877 = vst [vmem:[#allocation2 + $0x6c] sm:$0xcc] %v873_v52  ;;  %v901_v55 = vrot.slane %v899_v53, 4  ;;  %v900_v56 = vrot.slane %v897_v54, 4 }
 0x13a   : > { %v905_v57 = vsel %vm903_vm13, %v899_v53, %v901_v55  ;;  %v902_v58 = vsel %vm312_vm12, %v900_v56, %v901_v55 }
 0x13b   : > { %909 = vst [vmem:[#allocation2 + $0x80] sm:$0x3] %v905_v57  ;;  %v904_v59 = vsel %vm903_vm13, %v897_v54, %v902_v58  ;;  %v930_v60 = vpop.permute.xlu1 %929  ;;  %v928_v61 = vpop.permute.xlu0 %927 }
 0x13c   : > { %908 = vst [vmem:[#allocation2 + $0x78] sm:$0x33] %v904_v59  ;;  %v932_v62 = vrot.slane %v930_v60, 4  ;;  %v931_v63 = vrot.slane %v928_v61, 4 }
 0x13e   : > { %v936_v0 = vsel %vm934_vm14, %v930_v60, %v932_v62  ;;  %v933_v1 = vsel %vm312_vm12, %v931_v63, %v932_v62  ;;  %v1609_v2 = vld [vmem:[#allocation2 + $0x68] ss:$12 sps:$4 sm:$0xff]  }
 0x13f   : > { %940 = vst [vmem:[#allocation2 + $0x80] sm:$0xc] %v936_v0  ;;  %v935_v3 = vsel %vm934_vm14, %v928_v61, %v933_v1  ;;  %v961_v4 = vpop.permute.xlu1 %960  ;;  %v959_v5 = vpop.permute.xlu0 %958  ;;  %v1610_v6 = vld [vmem:[#allocation2 + $0x64] ss:$12 sps:$4 sm:$0xff]   ;;  %v1612_v7 = vld [vmem:[#allocation2 + $0x60] ss:$12 sps:$4 sm:$0xff]   ;;  %1482 = vmatprep.subr.bf16.mxu1 %v1609_v2 }
 0x140   : > { %939 = vst [vmem:[#allocation2 + $0x78] sm:$0xcc] %v935_v3  ;;  %v963_v8 = vrot.slane %v961_v4, 4  ;;  %v962_v9 = vrot.slane %v959_v5, 4  ;;  %1206 = vmatprep.subr.bf16.mxu0 %v1610_v6  ;;  %1483 = vmatpush3.bf16.msra.mxu1 %v1609_v2 }
 0x141   : > { %1207 = vmatpush1.bf16.msra.mxu0 %v1612_v7 }
 0x142   : > { %v967_v10 = vsel %vm965_vm15, %v961_v4, %v963_v8  ;;  %v964_v11 = vsel %vm312_vm12, %v962_v9, %v963_v8 }
 0x143   : > { %971 = vst [vmem:[#allocation2 + $0x8c] sm:$0x3] %v967_v10  ;;  %v966_v12 = vsel %vm965_vm15, %v959_v5, %v964_v11  ;;  %v992_v13 = vpop.permute.xlu1 %991  ;;  %v990_v14 = vpop.permute.xlu0 %989 }
 0x144   : > { %970 = vst [vmem:[#allocation2 + $0x84] sm:$0x33] %v966_v12  ;;  %v994_v15 = vrot.slane %v992_v13, 4  ;;  %v993_v16 = vrot.slane %v990_v14, 4 }
 0x146   : > { %v998_v17 = vsel %vm996_vm0, %v992_v13, %v994_v15  ;;  %v995_v18 = vsel %vm312_vm12, %v993_v16, %v994_v15 }
 0x147   : > { %1002 = vst [vmem:[#allocation2 + $0x8c] sm:$0xc] %v998_v17  ;;  %v997_v19 = vsel %vm996_vm0, %v990_v14, %v995_v18  ;;  %v1023_v20 = vpop.permute.xlu1 %1022  ;;  %v1021_v21 = vpop.permute.xlu0 %1020 }
 0x148   : > { %1001 = vst [vmem:[#allocation2 + $0x84] sm:$0xcc] %v997_v19  ;;  %v1025_v22 = vrot.slane %v1023_v20, 4  ;;  %v1024_v23 = vrot.slane %v1021_v21, 4 }
 0x14a   : > { %v1029_v24 = vsel %vm1027_vm1, %v1023_v20, %v1025_v22  ;;  %v1026_v25 = vsel %vm312_vm12, %v1024_v23, %v1025_v22 }
 0x14b   : > { %1033 = vst [vmem:[#allocation2 + $0x98] sm:$0x3] %v1029_v24  ;;  %v1028_v26 = vsel %vm1027_vm1, %v1021_v21, %v1026_v25 }
 0x14c   : > { %1032 = vst [vmem:[#allocation2 + $0x90] sm:$0x33] %v1028_v26 }
 0x14e   : > { %v1613_v27 = vld [vmem:[#allocation2 + $0x80] ss:$12 sps:$4 sm:$0xff]  }
 0x14f   : > { %v1614_v32 = vld [vmem:[#allocation2 + $0x7c] ss:$12 sps:$4 sm:$0xff]   ;;  %v1616_v33 = vld [vmem:[#allocation2 + $0x78] ss:$12 sps:$4 sm:$0xff]   ;;  %1484 = vmatprep.subr.bf16.mxu1 %v1613_v27 }
 0x150   : > { %1208 = vmatprep.subr.bf16.mxu0 %v1614_v32  ;;  %1485 = vmatpush3.bf16.msra.mxu1 %v1613_v27 }
 0x151   : > { %1209 = vmatpush1.bf16.msra.mxu0 %v1616_v33 }
 0x152   : > { %v1617_v35 = vld [vmem:[#allocation2 + $0x98] ss:$0 sps:$4 sm:$0x77]  }
 0x153   : > { %v1062_v36 = vld [vmem:[#allocation2 + $0x90] sm:$0x77]  ;;  %v1196_v37 = vand.u32 %v1617_v35, %v1188_v34 }
 0x154   : > { %v1455_v38 = vcombine.high %v1062_v36, %v1062_v36  ;;  %v1454_v39 = vcombine.low %v1062_v36, %v1062_v36 }
 0x155   : > { %1486 = vmatprep.subr.bf16.mxu1 %v1196_v37 }
 0x156   : > { %v1193_v40 = vand.u32 %v1455_v38, %v1188_v34  ;;  %v1190_v41 = vand.u32 %v1454_v39, %v1188_v34  ;;  %1487 = vmatpush3.bf16.msra.mxu1 %v1196_v37 }
 0x158   : > { %1210 = vmatprep.subr.bf16.mxu0 %v1193_v40 }
 0x159   : > { %1211 = vmatpush1.bf16.msra.mxu0 %v1190_v41  ;;  %1489 = vmatmul.mubr.msk.bf16.vlgmr.msra.gmra.mrb[0].mxu1 %vm531_vm7, %v1621_v42 }
 0x15c   : > { %1457 = vmatmul.mubr.msk.bf16.vlgmr.msra.gmra.mrb[0].mxu0 %vm531_vm7, %v2065_v30 }
 0x15d   : > { %1240 = vmatprep.mubr.bf16.mxu0 %v1812_v31 }
 0x164   : > { %1458 = vmatmul.mubr.msk.bf16.gmra.mrb[4].mxu0 %vm531_vm7, %v1621_v42 }
 0x22c   : > { %v1490_v43 = vpop.f32.mrb[0].mxu1 }
 0x22d   : > { %1308 = vst [vmem:[%s213_s5 + $0x40] sm:$0xff] %v1490_v43  ;;  %v1285_v44 = vpop.f32.mrb[1].mxu1 }
 0x22e   : > { %1302 = vst [vmem:[%s213_s5 + $0x10] sm:$0xff] %v1285_v44  ;;  %v1491_v46 = vpop.f32.mrb[2].mxu1 }
 0x22f   : > { %v1232_v45 = vpop.f32.mrb[0].mxu0  ;;  %1311 = vst [vmem:[%s213_s5 + $0x58] sm:$0xff] %v1491_v46  ;;  %v1288_v48 = vpop.f32.mrb[3].mxu1 }
 0x230   : > { %1300 = vst [vmem:[%s213_s5] sm:$0xff] %v1232_v45  ;;  %v1234_v47 = vpop.f32.mrb[1].mxu0  ;;  %1305 = vst [vmem:[%s213_s5 + $0x28] sm:$0xff] %v1288_v48 }
 0x231   : > { %1301 = vst [vmem:[%s213_s5 + $0x8] sm:$0xff] %v1234_v47  ;;  %v1236_v49 = vpop.f32.mrb[2].mxu0 }
 0x232   : > { %1303 = vst [vmem:[%s213_s5 + $0x18] sm:$0xff] %v1236_v49  ;;  %v1238_v30 = vpop.f32.mrb[3].mxu0 }
 0x233   : > { %1304 = vst [vmem:[%s213_s5 + $0x20] sm:$0xff] %v1238_v30 }
 0x237   : > { %v1242_v31 = vpop.f32.mrb[4].mxu0 }
 0x238   : > { %1306 = vst [vmem:[%s213_s5 + $0x30] sm:$0xff] %v1242_v31  ;;  %v1244_v50 = vpop.f32.mrb[5].mxu0 }
 0x239   : > { %1307 = vst [vmem:[%s213_s5 + $0x38] sm:$0xff] %v1244_v50  ;;  %v1246_v51 = vpop.f32.mrb[6].mxu0 }
 0x23a   : > { %1309 = vst [vmem:[%s213_s5 + $0x48] sm:$0xff] %v1246_v51  ;;  %v1248_v52 = vpop.f32.mrb[7].mxu0 }
 0x23b   : > { %1310 = vst [vmem:[%s213_s5 + $0x50] sm:$0xff] %v1248_v52 }
 0x23c   : > { %1723 = shalt.err (!%p1720_p7)
}
 0x23d   : > { %s1724_s20 = scalar_lea.hbm %s2114_s10, 1536  ;;  %s1728_s26 = scalar_lea.hbm %s2163_s3, 3072 }
 0x23e   : > { %p1725_p10 = scmp.ne.s32.totalorder %s2114_s10, %s1724_s20  ;;  %p1729_p0 = scmp.lt.u32.totalorder %s2114_s10, %s2163_s3 }
 0x23f   : > { %p1730_p9 = scmp.lt.u32.totalorder %s1728_s26, %s1724_s20  ;;  %p1732_p2 = scmp.lt.u32.totalorder %s1724_s20, %s2114_s10 }
 0x240   : > { %p1726_p13 = pnand %p1725_p10, %p1950_p4 }
 0x241   : > { %p1731_p11 = por %p1730_p9, %p1729_p0 }
 0x242   : > { %p1727_p5 = pneg %p1726_p13 }
 0x243   : > { %p1733_p1 = por %p1732_p2, %p1731_p11 }
 0x245   : > { %p1734_p6 = pnand %p1733_p1, %p1727_p5 }
 0x247   : > { %1737 = shalt.err (!%p1734_p6)
}
 0x248   : > { %s1815_s30 = smov 384   ;;  %s1816_s5 = smov 24  }
 0x249   : > { %1504 = dma.vmem_to_hbm [thread:$0]  (%p1950_p4), %s2116_s25, 1536, %s2114_s10, %s1313_s16, %s1815_s30, %s1815_s30, %s1816_s5  }
 0x24a PF: > { %s1341_s6 = sand.u32 1, %s1768_s12   ;;  %p2178_p8 = scmp.ne.s32.totalorder %s2168_s19, 0 }
 0x24b   : > { %p2179_p12 = scmp.ge.s32.totalorder %s1780_s15, 2  ;;  %s1342_s9 = scalar_lea.sflag [#allocation6], %s1341_s6 }
 0x24d   : > { %p1518_p3 = pnand %p2179_p12, %p2178_p8 }
 0x24f   : > { %1763 = dma.done.wait (!%p1518_p3), %s1342_s9, 1536  }
 0x250   : > { %1765 = vsyncadd (!%p1518_p3), %s1342_s9, 4294965760  ;;  %p17_p7 = scmp.ge.s32.totalorder %s1940_s4, 4   ;;  %s2180_s12 = smov %s1772_s13 }
 0x251   : > { %s2181_s13 = smov %s1776_s14  ;;  %s2182_s14 = smov %s1956_s8 }
 0x252   : > { %s2183_s15 = smov %s1940_s4  ;;  %19 = sbr.rel (!%p17_p7) target bundleno = 6 (0x6), region = 85 }
 0x259   :  { %1347 = vsyncpa [#allocation5], 1 }
 0x25a   :  { %1349 = vsyncpa [#allocation5 + $0x1], 1 }
 0x25b   :  { %1350 = vsyncpa [#allocation8], 1 }
 0x25c   :  { %1351 = vsyncpa [#allocation6], 1 }
 0x25d   :  { %1353 = vsyncpa [#allocation6 + $0x1], 1 }

</bundles_post_ra>
